<compile_context>
chip_gen: v5e
topology: v5e:2x2
jax: 0.10.0
libtpu: 0.0.40
codegen_flags: <defaults>
</compile_context>

<pallas_src>
import functools

import jax
import jax.numpy as jnp
from jax import lax
from jax.experimental import pallas as pl
from jax.experimental.pallas import tpu as pltpu


_TARGET_BLOCK_BYTES = 2 << 20  # aim for ~2 MiB input tiles (amortize step cost)


def _forward_grad_kernel(x_ref, dx_ref, dy_ref, *, H, W):
    # x_ref: (TB, H*W) block; each row is one flattened (H, W) image.
    x = x_ref[...]
    TB, HW = x.shape

    lane = lax.broadcasted_iota(jnp.int32, (TB, HW), 1)
    zeros = jnp.zeros_like(x)

    # Forward difference along W: neighbour of lane l is lane l+1, obtained by
    # rolling by HW-1 (== jnp.roll(x, -1)). Wrapped values land only in the
    # masked last column of each image row.
    x_next_w = pltpu.roll(x, HW - 1, axis=1)
    diff_x = jnp.where((lane % W) < (W - 1), x_next_w - x, zeros)

    # Forward difference along H: neighbour of lane l is lane l+W, obtained by
    # rolling by HW-W (== jnp.roll(x, -W)). Wrapped values land only in the
    # masked last image row.
    x_next_h = pltpu.roll(x, HW - W, axis=1)
    diff_y = jnp.where(lane < (H - 1) * W, x_next_h - x, zeros)

    dx_ref[...] = diff_x
    dy_ref[...] = diff_y


def _choose_tb(batch, row_bytes):
    """Pick how many flattened images go into one block."""
    tb = max(1, int(_TARGET_BLOCK_BYTES // row_bytes))
    if tb >= batch:
        return batch                      # whole batch in one block
    # Keep the sublane dim a multiple of 8 when not processing the full batch.
    tb = max(8, (tb // 8) * 8)
    # TODO(synk): images whose single flattened plane is itself multiple MiB
    # (e.g. 2048x2048 f32) would need H-tiling with a one-row halo to stay
    # inside v7x's 64 MiB VMEM; not implemented here.
    return min(tb, batch)


def forward_grad(x):
    """x: (N, C, H, W) float array (C should be 1 to match Conv2d(1,1,...))."""
    N, C, H, W = x.shape
    B = N * C
    HW = H * W
    itemsize = jnp.dtype(x.dtype).itemsize

    # Adjacent-dim merge: lane-dense last axis, no transpose / data movement.
    x_flat = x.reshape(B, HW)

    tb = _choose_tb(B, HW * itemsize)
    b_pad = pl.cdiv(B, tb) * tb
    if b_pad != B:
        x_flat = jnp.pad(x_flat, ((0, b_pad - B), (0, 0)))

    spec = pl.BlockSpec((tb, HW), lambda i: (i, 0))
    kernel = functools.partial(_forward_grad_kernel, H=H, W=W)

    diff_x, diff_y = pl.pallas_call(
        kernel,
        out_shape=(
            jax.ShapeDtypeStruct((b_pad, HW), x.dtype),
            jax.ShapeDtypeStruct((b_pad, HW), x.dtype),
        ),
        grid_spec=pltpu.PrefetchScalarGridSpec(
            num_scalar_prefetch=0,
            grid=(b_pad // tb,),
            in_specs=[spec],
            out_specs=(spec, spec),
        ),
        compiler_params=pltpu.CompilerParams(
            dimension_semantics=("parallel",),   # shards across TCs on v7x
            vmem_limit_bytes=32 << 20,           # lifts v5e's 16 MiB default
        ),
        cost_estimate=pl.CostEstimate(
            flops=2 * B * HW,
            transcendentals=0,
            bytes_accessed=3 * B * HW * itemsize,  # 1 read + 2 writes
        ),
    )(x_flat)

    if b_pad != B:
        diff_x = diff_x[:B]
        diff_y = diff_y[:B]
    return diff_x.reshape(N, C, H, W), diff_y.reshape(N, C, H, W)


def forward_grad_ref(x):
    # Pure-JAX reference replicating the PyTorch module.
    N, C, H, W = x.shape
    pad_right = jnp.pad(x, ((0, 0), (0, 0), (0, 0), (0, 1)))
    pad_bottom = jnp.pad(x, ((0, 0), (0, 0), (0, 1), (0, 0)))
    diff_x = pad_right[:, :, :, 1:] - pad_right[:, :, :, :-1]
    diff_y = pad_bottom[:, :, 1:, :] - pad_bottom[:, :, :-1, :]
    diff_x = diff_x.at[:, :, :, W - 1].set(0.0)
    diff_y = diff_y.at[:, :, H - 1, :].set(0.0)
    return diff_x, diff_y


if __name__ == "__main__":
    key = jax.random.PRNGKey(0)
    # Conv2d(1, 1, ...) requires a single input channel.
    x = jax.random.normal(key, (2, 1, 16, 16), dtype=jnp.float32)

    dx, dy = forward_grad(x)
    jax.block_until_ready((dx, dy))

    dx_ref, dy_ref = forward_grad_ref(x)
    assert jnp.allclose(dx, dx_ref, atol=1e-6), "diff_x mismatch"
    assert jnp.allclose(dy, dy_ref, atol=1e-6), "diff_y mismatch"

    print("KERNEL_OK")
</pallas_src>

<mosaic_0001>
module attributes {stable_mosaic.version = 11 : i64} {
  func.func @_forward_grad_kernel(%arg0: i32, %arg1: memref<2x256xf32, #tpu.memory_space<vmem>>, %arg2: memref<2x256xf32, #tpu.memory_space<vmem>>, %arg3: memref<2x256xf32, #tpu.memory_space<vmem>>) attributes {dimension_semantics = [#tpu.dimension_semantics<parallel>], iteration_bounds = array<i64: 1>, scalar_prefetch = 0 : i64, scratch_operands = 0 : i64, tpu.core_type = #tpu.core_type<tc>, window_params = [{transform_indices = @transform_0, window_bounds = array<i64: 2, 256>}, {transform_indices = @transform_1, window_bounds = array<i64: 2, 256>}, {transform_indices = @transform_2, window_bounds = array<i64: 2, 256>}]} {
    %c0 = arith.constant 0 : index
    %c0_0 = arith.constant 0 : index
    %0 = vector.load %arg1[%c0, %c0_0] : memref<2x256xf32, #tpu.memory_space<vmem>>, vector<2x256xf32>
    %1 = tpu.iota {dimensions = array<i32: 1>} : vector<2x256xi32>
    %cst = arith.constant 0.000000e+00 : f32
    %2 = vector.broadcast %cst : f32 to vector<2x256xf32>
    %c255_i32 = arith.constant 255 : i32
    %3 = tpu.dynamic_rotate %0 by %c255_i32 dim 1 : vector<2x256xf32>, i32 -> vector<2x256xf32>
    %c16_i32 = arith.constant 16 : i32
    %c0_i32 = arith.constant 0 : i32
    %4 = arith.cmpi eq, %c16_i32, %c0_i32 : i32
    %c1_i32 = arith.constant 1 : i32
    %5 = arith.select %4, %c1_i32, %c16_i32 : i32
    %6 = vector.broadcast %5 : i32 to vector<2x256xi32>
    %7 = arith.remsi %1, %6 : vector<2x256xi32>
    %c0_i32_1 = arith.constant 0 : i32
    %8 = vector.broadcast %c0_i32_1 : i32 to vector<2x256xi32>
    %9 = arith.cmpi ne, %7, %8 : vector<2x256xi32>
    %c0_i32_2 = arith.constant 0 : i32
    %10 = vector.broadcast %c0_i32_2 : i32 to vector<2x256xi32>
    %11 = arith.cmpi slt, %7, %10 : vector<2x256xi32>
    %c0_i32_3 = arith.constant 0 : i32
    %12 = arith.cmpi slt, %5, %c0_i32_3 : i32
    %13 = vector.broadcast %12 : i1 to vector<2x256xi1>
    %14 = vector.broadcast %13 : vector<2x256xi1> to vector<2x256xi1>
    %15 = arith.xori %11, %14 : vector<2x256xi1>
    %16 = arith.andi %15, %9 : vector<2x256xi1>
    %17 = vector.broadcast %5 : i32 to vector<2x256xi32>
    %18 = arith.addi %7, %17 : vector<2x256xi32>
    %19 = arith.select %16, %18, %7 : vector<2x256xi1>, vector<2x256xi32>
    %c15_i32 = arith.constant 15 : i32
    %20 = vector.broadcast %c15_i32 : i32 to vector<2x256xi32>
    %21 = arith.cmpi slt, %19, %20 : vector<2x256xi32>
    %22 = arith.subf %3, %0 : vector<2x256xf32>
    %23 = arith.select %21, %22, %2 : vector<2x256xi1>, vector<2x256xf32>
    %c240_i32 = arith.constant 240 : i32
    %24 = tpu.dynamic_rotate %0 by %c240_i32 dim 1 : vector<2x256xf32>, i32 -> vector<2x256xf32>
    %c240_i32_4 = arith.constant 240 : i32
    %25 = vector.broadcast %c240_i32_4 : i32 to vector<2x256xi32>
    %26 = arith.cmpi slt, %1, %25 : vector<2x256xi32>
    %27 = arith.subf %24, %0 : vector<2x256xf32>
    %28 = arith.select %26, %27, %2 : vector<2x256xi1>, vector<2x256xf32>
    %c0_5 = arith.constant 0 : index
    %c0_6 = arith.constant 0 : index
    %29 = vector.load %arg2[%c0_5, %c0_6] : memref<2x256xf32, #tpu.memory_space<vmem>>, vector<2x256xf32>
    tpu.vector_store %arg2[%c0_5, %c0_6], %23 {strides = array<i32>} : memref<2x256xf32, #tpu.memory_space<vmem>>, vector<2x256xf32>,
    %c0_7 = arith.constant 0 : index
    %c0_8 = arith.constant 0 : index
    %30 = vector.load %arg3[%c0_7, %c0_8] : memref<2x256xf32, #tpu.memory_space<vmem>>, vector<2x256xf32>
    tpu.vector_store %arg3[%c0_7, %c0_8], %28 {strides = array<i32>} : memref<2x256xf32, #tpu.memory_space<vmem>>, vector<2x256xf32>,
    return
  }
  func.func @transform_0(%arg0: i32) -> (i32, i32) {
    %c0_i32 = arith.constant 0 : i32
    %c0_i32_0 = arith.constant 0 : i32
    return %arg0, %c0_i32 : i32, i32
  }
  func.func @transform_1(%arg0: i32) -> (i32, i32) {
    %c0_i32 = arith.constant 0 : i32
    %c0_i32_0 = arith.constant 0 : i32
    return %arg0, %c0_i32 : i32, i32
  }
  func.func @transform_2(%arg0: i32) -> (i32, i32) {
    %c0_i32 = arith.constant 0 : i32
    %c0_i32_0 = arith.constant 0 : i32
    return %arg0, %c0_i32 : i32, i32
  }
}

</mosaic_0001>

<bundles_post_ra>
// kernel: tpu_custom_call.1
= control target key start
LH: loop header
LB: loop body
LE: loop exit
PB: predicated region body
PF: predicated region fallthrough
CT: control target
= control target key end

     0   :  { %8 = vsyncpa [#allocation3], 0  ;;  %s261_s0 = inlined_call_operand.hbm [shape: f32[2,256], index: 0, kind: input, shape index: {}]   ;;  %s262_s1 = inlined_call_operand.hbm [shape: f32[2,256], index: 1, kind: output, shape index: {0}]   ;;  %s263_s2 = inlined_call_operand.hbm [shape: f32[2,256], index: 2, kind: output, shape index: {1}]  }
   0x1   :  { %9 = vsyncpa [#allocation4], 0 }
   0x2   :  { %10 = vsyncpa [#allocation7], 0  ;;  %s16_s11 = sshll.u32 %s261_s0, 4  ;;  %s230_s12 = smov [#allocation2]   ;;  %s17_s11 = int_to_ptr.hbm [resolvable:$true] %s16_s11 }
   0x3   :  { %s18_s13 = sshll.u32 %s230_s12, 4  ;;  %s19_s13 = int_to_ptr.vmem [resolvable:$true] %s18_s13 }
   0x4   :  { %21 = dma.hbm_to_vmem [thread:$0]  %s17_s11, 64, %s19_s13, [#allocation3]  }
   0x5   :  { %224 = dma.done.wait [#allocation3], 64  }
   0x6   :  { %225 = vsyncadd [#allocation3], 4294967232  ;;  %v26_v0 = vld [vmem:[#allocation2] sm:$0xf]  ;;  %s231_s14 = smov 127   ;;  %s232_s0 = smov 112   ;;  %v27_v7 = vlaneseq }
   0x7   :  { %31 = vst [vmem:[#allocation1] ss:$4 sm:$0xff] %v26_v0  ;;  %s233_s15 = smov [#allocation5]   ;;  %s121_s19 = sshll.u32 %s262_s1, 4  ;;  %vm104_vm3 = vcmask 1041408   ;;  %s122_s19 = int_to_ptr.hbm [resolvable:$true] %s121_s19 }
   0x8   :  { %v28_v8 = vand.u32 127, %v27_v7  ;;  %s119_s16 = sshll.u32 %s233_s15, 4  ;;  %s234_s1 = smov [#allocation6]   ;;  %s120_s16 = int_to_ptr.vmem [resolvable:$true] %s119_s16 }
   0x9   :  { %s130_s20 = sshll.u32 %s234_s1, 4  ;;  %s132_s23 = sshll.u32 %s263_s2, 4  ;;  %s131_s20 = int_to_ptr.vmem [resolvable:$true] %s130_s20  ;;  %s133_s23 = int_to_ptr.hbm [resolvable:$true] %s132_s23 }
   0xa   :  { %v29_v10 = vadd.s32 128, %v28_v8  ;;  %v47_v11 = vand.u32 15, %v28_v8  ;;  %vm40_vm0 = vcmp.lt.s32.totalorder %v28_v8, 127  ;;  %vm87_vm4 = vcmp.lt.s32.totalorder %v28_v8, 112 }
   0xc   :  { %v54_v12 = vand.u32 15, %v29_v10  ;;  %vm67_vm1 = vcmp.lt.s32.totalorder %v47_v11, 15  ;;  %vm91_vm5 = vcmp.lt.s32.totalorder %v29_v10, 240 }
   0xe   :  { %v32_v1 = vld.sshfl [vmem:[#allocation1] sm:$0xff pattern:$0x73625140]  ;;  %v33_v2 = vld.sshfl [vmem:[#allocation1 + $0x8] sm:$0xff pattern:$0x73625140] }
   0xf   :  { %36 = vrot.lane.b32.xlu0 %v32_v1, %s231_s14  ;;  %69 = vst [vmem:[#allocation1] ss:$4 sm:$0xff] %v26_v0  ;;  %vm68_vm2 = vcmp.lt.s32.totalorder %v54_v12, 15 }
  0x16   :  { %v70_v3 = vld.sshfl [vmem:[#allocation1] sm:$0xff pattern:$0x73625140]  ;;  %v71_v4 = vld.sshfl [vmem:[#allocation1 + $0x8] sm:$0xff pattern:$0x73625140] }
  0x17   :  { %38 = vrot.lane.b32.xlu0 %v33_v2, %s231_s14  ;;  %78 = vst [vmem:[#allocation1] ss:$4 sm:$0xff] %v26_v0 }
  0x1e   :  { %v79_v5 = vld.sshfl [vmem:[#allocation1] sm:$0xff pattern:$0x73625140]  ;;  %v80_v6 = vld.sshfl [vmem:[#allocation1 + $0x8] sm:$0xff pattern:$0x73625140] }
  0x1f   :  { %83 = vrot.lane.b32.xlu1 %v79_v5, %s232_s0  ;;  %92 = vst [vmem:[#allocation1] ss:$4 sm:$0xff] %v26_v0 }
  0x26   :  { %v94_v23 = vld.sshfl [vmem:[#allocation1 + $0x8] sm:$0xff pattern:$0x73625140]  ;;  %v93_v27 = vld.sshfl [vmem:[#allocation1] sm:$0xff pattern:$0x73625140] }
  0x27   :  { %85 = vrot.lane.b32.xlu1 %v80_v6, %s232_s0 }
  0x81   :  { %v37_v9 = vpop.permute.xlu0 %36 }
  0x89   :  { %v39_v13 = vpop.permute.xlu0 %38 }
  0x8a   :  { %v41_v14 = vsel %vm40_vm0, %v37_v9, %v39_v13  ;;  %v42_v15 = vsel %vm40_vm0, %v39_v13, %v37_v9 }
  0x8b   :  { %v74_v16 = vsub.f32 %v41_v14, %v70_v3  ;;  %v75_v17 = vsub.f32 %v42_v15, %v71_v4 }
  0x8d   :  { %v76_v18 = vsel %vm67_vm1, %v74_v16, 0.0  ;;  %v77_v19 = vsel %vm68_vm2, %v75_v17, 0.0 }
  0x8e   :  { %v103_v20 = vrot.slane %v77_v19, 6 }
  0x90   :  { %v105_v21 = vsel %vm104_vm3, %v76_v18, %v103_v20 }
  0x91   :  { %v84_v22 = vpop.permute.xlu1 %83  ;;  %107 = vst [vmem:[#allocation5] sm:$0xf] %v105_v21 }
  0x92   :  { %124 = dma.vmem_to_hbm [thread:$0]  %s120_s16, 64, %s122_s19, [#allocation4]  }
  0x99   :  { %v86_v24 = vpop.permute.xlu1 %85 }
  0x9a   :  { %v89_v25 = vsel %vm87_vm4, %v86_v24, %v84_v22  ;;  %v88_v26 = vsel %vm87_vm4, %v84_v22, %v86_v24 }
  0x9b   :  { %v98_v28 = vsub.f32 %v89_v25, %v94_v23  ;;  %v97_v30 = vsub.f32 %v88_v26, %v93_v27 }
  0x9d   :  { %v100_v29 = vsel %vm91_vm5, %v98_v28, 0.0 }
  0x9e   :  { %v110_v31 = vrot.slane %v100_v29, 6 }
  0xa0   :  { %v111_v32 = vsel %vm104_vm3, %v97_v30, %v110_v31 }
  0xa1   :  { %113 = vst [vmem:[#allocation6] sm:$0xf] %v111_v32 }
  0xa2   :  { %135 = dma.vmem_to_hbm [thread:$0]  %s131_s20, 64, %s133_s23, [#allocation7]  }
  0xa3   :  { %226 = dma.done.wait [#allocation4], 64  }
  0xa4   :  { %227 = vsyncadd [#allocation4], 4294967232 }
  0xa5   :  { %228 = dma.done.wait [#allocation7], 64  }
  0xa6   :  { %229 = vsyncadd [#allocation7], 4294967232 }
  0xa7   :  { %144 = vsyncpa [#allocation3], 1 }
  0xa8   :  { %145 = vsyncpa [#allocation4], 1 }
  0xa9   :  { %146 = vsyncpa [#allocation7], 1 }

</bundles_post_ra>
